<compile_context>
chip_gen: v7x
topology: tpu7x:2x2x1
jax: 0.10.0
libtpu: 0.0.40
codegen_flags: <defaults>
</compile_context>

<pallas_src>
import jax
import jax.numpy as jnp
from jax.experimental import pallas as pl
from jax.experimental.pallas import tpu as pltpu


def _round_up(x: int, m: int) -> int:
    return ((x + m - 1) // m) * m


# Per-buffer VMEM budget. With default double buffering of one input and one
# output this is <= 4 * 4 MiB = 16 MiB of pipelined footprint: comfortably
# inside v5e/v6e/v7x once the scoped limit is raised to 32 MiB (below), and
# big enough (>= 85% of measured HBM roofline) that per-step overhead is
# amortized on all generations.
_PER_BUFFER_BUDGET = 4 * 1024 * 1024
_VMEM_LIMIT_BYTES = 32 * 1024 * 1024

# Minimum sublane multiple per element size (packed dtypes need taller tiles).
_SUBLANE_BY_ITEMSIZE = {4: 8, 2: 16, 1: 32}


def _chomp_rows_kernel(x_ref, o_ref):
    # x_ref: (tm, tl_in) covering lanes [0, tl_in) of the row; keep the first
    # L_out lanes. Static slice from offset 0 -> no cross-lane shuffling.
    o_ref[...] = x_ref[:, : o_ref.shape[-1]]


def _copy_tile_kernel(x_ref, o_ref):
    # Fallback path: identical, 128-aligned blocks for in/out -> pure copy.
    o_ref[...] = x_ref[...]


def chomp1d(x: jax.Array, chomp_size: int) -> jax.Array:
    """Truncate `chomp_size` elements from the end of the last axis.

    Matches PyTorch `x[:, :, :-chomp_size].contiguous()`, including the
    degenerate `chomp_size == 0` / `chomp_size >= L` cases (empty output).
    """
    assert chomp_size >= 0, "chomp_size must be non-negative"
    n, c, l = x.shape

    # PyTorch x[..., :-0] and x[..., :-k] with k >= L both yield an empty
    # tensor; reproduce that without launching a kernel.
    l_out = 0 if chomp_size == 0 else max(l - chomp_size, 0)
    if l_out == 0:
        return jnp.zeros((n, c, 0), dtype=x.dtype)

    nc = n * c
    x2 = x.reshape(nc, l)  # free reshape; L remains the last (lane) axis

    itemsize = jnp.dtype(x.dtype).itemsize
    sub = _SUBLANE_BY_ITEMSIZE.get(itemsize, 8)

    # Input block width: 128-aligned cover of the kept region, clamped to the
    # full array extent (both forms satisfy the TPU block-shape rules).
    tl_in = min(l, _round_up(l_out, 128))
    cp_pad = _round_up(tl_in, 128)  # VMEM lane padding, for budget math

    cost = pl.CostEstimate(
        flops=0,
        transcendentals=0,
        bytes_accessed=2 * nc * l_out * itemsize,  # read kept region + write
    )
    compiler_params = pltpu.CompilerParams(
        dimension_semantics=None,  # filled per-path below
        vmem_limit_bytes=_VMEM_LIMIT_BYTES,
    )

    full_width_fits = sub * cp_pad * itemsize <= _PER_BUFFER_BUDGET

    if full_width_fits:
        # ---- Primary path: full-width column block, 1-D grid over rows ----
        tm = (_PER_BUFFER_BUDGET // (cp_pad * itemsize)) // sub * sub
        tm = max(sub, min(tm, _round_up(nc, sub)))
        if nc >= 2 * sub:
            # Ensure at least 2 row blocks so the parallel axis can shard
            # across the 2 TensorCores on v7x.
            tm = min(tm, _round_up(pl.cdiv(nc, 2), sub))

        grid = (pl.cdiv(nc, tm),)
        out2 = pl.pallas_call(
            _chomp_rows_kernel,
            out_shape=jax.ShapeDtypeStruct((nc, l_out), x.dtype),
            grid_spec=pltpu.PrefetchScalarGridSpec(
                num_scalar_prefetch=0,
                grid=grid,
                in_specs=[pl.BlockSpec((tm, tl_in), lambda i: (i, 0))],
                out_specs=pl.BlockSpec((tm, l_out), lambda i: (i, 0)),
            ),
            compiler_params=pltpu.CompilerParams(
                dimension_semantics=("parallel",),
                vmem_limit_bytes=_VMEM_LIMIT_BYTES,
            ),
            cost_estimate=cost,
        )(x2)
    else:
        # ---- Fallback: very long L_out -> 2-D grid, same-shaped blocks ----
        tm = min(_round_up(nc, sub), 512)  # 512 is a multiple of 8/16/32
        tl = max(128, (_PER_BUFFER_BUDGET // (tm * itemsize)) // 128 * 128)

        grid = (pl.cdiv(nc, tm), pl.cdiv(l_out, tl))
        out2 = pl.pallas_call(
            _copy_tile_kernel,
            out_shape=jax.ShapeDtypeStruct((nc, l_out), x.dtype),
            grid_spec=pltpu.PrefetchScalarGridSpec(
                num_scalar_prefetch=0,
                grid=grid,
                in_specs=[pl.BlockSpec((tm, tl), lambda i, j: (i, j))],
                out_specs=pl.BlockSpec((tm, tl), lambda i, j: (i, j)),
            ),
            compiler_params=pltpu.CompilerParams(
                dimension_semantics=("parallel", "parallel"),
                vmem_limit_bytes=_VMEM_LIMIT_BYTES,
            ),
            cost_estimate=cost,
        )(x2)

    return out2.reshape(n, c, l_out)


if __name__ == "__main__":
    # Small deterministic example consistent with a Conv1d activation:
    # batch=2, channels=4, seq=16, chomp_size=3 -> output seq=13
    key = jax.random.PRNGKey(0)
    n, c, l = 2, 4, 16
    chomp_size = 3

    x = jax.random.normal(key, (n, c, l), dtype=jnp.float32)

    out = chomp1d(x, chomp_size)
    out = jax.block_until_ready(out)

    ref = x[:, :, :-chomp_size]
    assert out.shape == (n, c, l - chomp_size), out.shape
    assert jnp.array_equal(out, ref), "mismatch vs reference slice"

    # Larger, non-aligned shape: multi-row-block grid + partial row tile,
    # non-128-multiple kept width.
    n2, c2, l2, ch2 = 3, 70, 1000, 7
    x2 = jax.random.normal(jax.random.PRNGKey(1), (n2, c2, l2), dtype=jnp.float32)
    out2 = jax.block_until_ready(chomp1d(x2, ch2))
    assert jnp.array_equal(out2, x2[:, :, :-ch2]), "mismatch on large case"

    # bf16 case: exercises dtype-aware sublane rounding (16-row minimum).
    n3, c3, l3, ch3 = 2, 16, 200, 4
    x3 = jax.random.normal(jax.random.PRNGKey(2), (n3, c3, l3)).astype(jnp.bfloat16)
    out3 = jax.block_until_ready(chomp1d(x3, ch3))
    assert jnp.array_equal(out3, x3[:, :, :-ch3]), "mismatch on bf16 case"

    # Degenerate cases matching PyTorch: chomp_size == 0 and chomp_size >= L.
    assert chomp1d(x, 0).shape == (n, c, 0)
    assert chomp1d(x, l + 5).shape == (n, c, 0)

    print("KERNEL_OK")
</pallas_src>

<mosaic_0001>
module attributes {stable_mosaic.version = 11 : i64} {
  func.func @_chomp_rows_kernel(%arg0: i32, %arg1: memref<8x16xf32, #tpu.memory_space<vmem>>, %arg2: memref<8x13xf32, #tpu.memory_space<vmem>>) attributes {dimension_semantics = [#tpu.dimension_semantics<parallel>], iteration_bounds = array<i64: 1>, scalar_prefetch = 0 : i64, scratch_operands = 0 : i64, tpu.core_type = #tpu.core_type<tc>, window_params = [{transform_indices = @transform_0, window_bounds = array<i64: 8, 16>}, {transform_indices = @transform_1, window_bounds = array<i64: 8, 13>}]} {
    %c0 = arith.constant 0 : index
    %c0_0 = arith.constant 0 : index
    %0 = vector.load %arg1[%c0, %c0_0] : memref<8x16xf32, #tpu.memory_space<vmem>>, vector<8x13xf32>
    %c0_1 = arith.constant 0 : index
    %c0_2 = arith.constant 0 : index
    %1 = vector.load %arg2[%c0_1, %c0_2] : memref<8x13xf32, #tpu.memory_space<vmem>>, vector<8x13xf32>
    tpu.vector_store %arg2[%c0_1, %c0_2], %0 {strides = array<i32>} : memref<8x13xf32, #tpu.memory_space<vmem>>, vector<8x13xf32>,
    return
  }
  func.func @transform_0(%arg0: i32) -> (i32, i32) {
    %c0_i32 = arith.constant 0 : i32
    %c0_i32_0 = arith.constant 0 : i32
    return %arg0, %c0_i32 : i32, i32
  }
  func.func @transform_1(%arg0: i32) -> (i32, i32) {
    %c0_i32 = arith.constant 0 : i32
    %c0_i32_0 = arith.constant 0 : i32
    return %arg0, %c0_i32 : i32, i32
  }
}

</mosaic_0001>

<bundles_post_ra>
// kernel: tpu_custom_call.1
= control target key start
LH: loop header
LB: loop body
LE: loop exit
PB: predicated region body
PF: predicated region fallthrough
CT: control target
= control target key end

     0   :  { %6 = vsyncpa [#allocation3], 0  ;;  %s125_s0 = inlined_call_operand.hbm [shape: f32[8,16], index: 0, kind: input, shape index: {}]   ;;  %s126_s1 = inlined_call_operand.hbm [shape: f32[8,13], index: 1, kind: output, shape index: {}]  }
   0x1   :  { %7 = vsyncpa [#allocation4], 0  ;;  %s89_s6 = smov [#allocation2]   ;;  %s41_s10 = scalar_lea.hbm %s125_s0, 128 }
   0x2   :  { %s14_s7 = sshll.u32 %s89_s6, 4  ;;  %p42_p0 = scmp.ne.s32.totalorder %s125_s0, %s41_s10  ;;  %s15_s7 = int_to_ptr.vmem [resolvable:$true] %s14_s7 }
   0x3   :  { %p45_p1 = scmp.lt.u32.totalorder %s41_s10, %s125_s0 }
   0x5   :  { %p47_p2 = pnand %p45_p1, %p42_p0 }
   0x7   :  { %50 = shalt.err (!%p47_p2)
}
   0x8   :  { %s51_s15 = scalar_lea.vmem %s15_s7, 128  ;;  %p56_p4 = scmp.lt.s32.totalorder %s15_s7, %s15_s7 }
   0x9   :  { %p52_p3 = scmp.ne.s32.totalorder %s15_s7, %s51_s15  ;;  %p57_p5 = scmp.lt.s32.totalorder %s51_s15, %s51_s15 }
   0xb   :  { %p58_p6 = por %p57_p5, %p56_p4 }
   0xd   :  { %p59_p7 = pnand %p58_p6, %p52_p3 }
   0xf   :  { %62 = shalt.err (!%p59_p7)
}
  0x10   :  { %17 = dma.hbm_to_vmem [thread:$0]  %s125_s0, 128, %s15_s7, [#allocation3]  }
  0x11   :  { %85 = dma.done.wait [#allocation3], 128  }
  0x12   :  { %86 = vsyncadd [#allocation3], 4294967168  ;;  %s90_s18 = smov [#allocation5]   ;;  %vm22_vm0 = vcmask 105472   ;;  %v21_v0 = vld [vmem:[#allocation2] sm:$0xff] }
  0x13   :  { %s30_s19 = sshll.u32 %s90_s18, 4  ;;  %23 = vst.msk [vmem:[#allocation5] sm:$0xff] %vm22_vm0, %v21_v0  ;;  %s31_s19 = int_to_ptr.vmem [resolvable:$true] %s30_s19 }
  0x14   :  { %s63_s20 = scalar_lea.vmem %s31_s19, 128  ;;  %p68_p9 = scmp.lt.s32.totalorder %s31_s19, %s31_s19 }
  0x15   :  { %p64_p8 = scmp.ne.s32.totalorder %s31_s19, %s63_s20  ;;  %p69_p10 = scmp.lt.s32.totalorder %s63_s20, %s63_s20 }
  0x17   :  { %p70_p11 = por %p69_p10, %p68_p9 }
  0x19   :  { %p71_p12 = pnand %p70_p11, %p64_p8 }
  0x1b   :  { %74 = shalt.err (!%p71_p12)
}
  0x1c   :  { %s75_s23 = scalar_lea.hbm %s126_s1, 128 }
  0x1d   :  { %p76_p13 = scmp.ne.s32.totalorder %s126_s1, %s75_s23  ;;  %p79_p0 = scmp.lt.u32.totalorder %s75_s23, %s126_s1 }
  0x1f   :  { %p81_p1 = pnand %p79_p0, %p76_p13 }
  0x21   :  { %84 = shalt.err (!%p81_p1)
}
  0x22   :  { %33 = dma.vmem_to_hbm [thread:$0]  %s31_s19, 128, %s126_s1, [#allocation4]  }
  0x23   :  { %87 = dma.done.wait [#allocation4], 128  }
  0x24   :  { %88 = vsyncadd [#allocation4], 4294967168 }
  0x25   :  { %37 = vsyncpa [#allocation3], 1 }
  0x26   :  { %38 = vsyncpa [#allocation4], 1 }

</bundles_post_ra>
